<compile_context>
chip_gen: v7x
topology: tpu7x:2x2x1
jax: 0.10.0
libtpu: 0.0.40
codegen_flags: <defaults>
</compile_context>

<pallas_src>
import math

import jax
import jax.numpy as jnp
from jax.experimental import pallas as pl
from jax.experimental.pallas import tpu as pltpu


def _patch_embed_kernel(x_ref, w_ref, pos_ref, o_ref):
    # x_ref:   (TM, C)  token rows for TB batch elements (TM = TB*43);
    #                   row 0 of each batch element is all-zero (cls slot).
    # w_ref:   (C,  E)  conv weight * sqrt(E)
    # pos_ref: (TM, E)  pos_embed + bias*sqrt(E) (cls*sqrt(E)+pos[0] on row 0),
    #                   tiled TB times; VMEM-resident (constant index_map).
    # o_ref:   (TM, E)  output rows, lane-dense (E = 128).
    proj = jnp.dot(x_ref[...], w_ref[...], preferred_element_type=jnp.float32)
    o_ref[...] = (proj + pos_ref[...]).astype(o_ref.dtype)


def patch_embedding(x_nchw, w, b, cls_token, pos_embed, *,
                    batch_tile=128, out_dtype=jnp.float32):
    """x_nchw: (N, C, H, W).  w: (C, E) (transposed 1x1 Conv2d weight).
    Returns (N, H*W + 1, E) in out_dtype (default float32 = PyTorch semantics).
    """
    N, C, H, W = x_nchw.shape
    E = w.shape[1]
    P = H * W
    T = P + 1                    # tokens per batch element (cls + patches)
    K = C                        # contraction dim: just the channels now
    scale = math.sqrt(E)

    # ---- trace-time constant folding --------------------------------------
    #   w_aug           = w * sqrt(E)                        (C, E)
    #   pos_aug row 0   = cls*sqrt(E) + pos[0]               (bypasses MXU)
    #   pos_aug rows 1+ = b  *sqrt(E) + pos[1:]
    w_aug = w.astype(jnp.float32) * scale
    pos = pos_embed.reshape(T, E).astype(jnp.float32)
    pos_aug = jnp.concatenate(
        [cls_token.reshape(1, E).astype(jnp.float32) * scale + pos[:1],
         b.reshape(1, E).astype(jnp.float32) * scale + pos[1:]],
        axis=0)                                               # (T, E)

    # ---- token matrix: (N, T, C); cls row is all zeros ---------------------
    # TODO(synk): if the caller can supply NHWC directly, drop this transpose.
    x_npc = jnp.transpose(x_nchw, (0, 2, 3, 1)).reshape(N, P, C)
    x_npc = x_npc.astype(jnp.float32)
    x_aug = jnp.concatenate([jnp.zeros((N, 1, C), jnp.float32), x_npc], axis=1)

    # ---- adaptive batch tiling ---------------------------------------------
    #  * TB batch elements (TM = TB*T token rows) per grid step.
    #  * TB is a multiple of 8 when multi-stepping so TM obeys the (8,128)
    #    block rule; a single step uses the exact full array.
    #  * Force >= 2 grid steps whenever N >= 16 (v7x megacore: "parallel"
    #    grid axes shard across its two TensorCores).
    #  * TB ~ ceil(N/steps) minimizes padded tail rows (pure wasted writes).
    min_steps = 2 if N >= 16 else 1
    steps = max(min_steps, pl.cdiv(N, max(1, batch_tile)))
    if steps == 1:
        TB, Np = N, N
    else:
        TB = max(8, ((pl.cdiv(N, steps) + 7) // 8) * 8)
        Np = pl.cdiv(N, TB) * TB
        if Np // TB == 1:        # rounding collapsed it back to one step
            TB, Np = N, N
    steps = Np // TB
    TM = TB * T

    if Np > N:
        x_aug = jnp.pad(x_aug, ((0, Np - N), (0, 0), (0, 0)))
    x_flat = x_aug.reshape(Np * T, K)                         # (M, K)
    pos_tile = jnp.tile(pos_aug, (TB, 1))                     # (TM, E)

    # ---- VMEM budget: ~6 tiles of (TM, 128) f32 (x/pos/out, double-buffered;
    # the (TM, 3) x block lane-pads to 128).  v5e default scoped limit is only
    # 16 MiB, so raise it explicitly but stay well under v7x's 64 MiB physical.
    footprint = 6 * TM * 128 * 4 + 2 * K * E * 4
    vmem_limit = int(min(100 * 1024 * 1024,
                         max(32 * 1024 * 1024, (footprint * 3) // 2)))

    out_isize = jnp.dtype(out_dtype).itemsize
    cost = pl.CostEstimate(
        flops=2 * Np * T * K * E,
        bytes_accessed=Np * T * (K * 4 + E * 4 + E * out_isize),
        transcendentals=0)

    out_flat = pl.pallas_call(
        _patch_embed_kernel,
        out_shape=jax.ShapeDtypeStruct((Np * T, E), out_dtype),
        grid_spec=pltpu.PrefetchScalarGridSpec(
            num_scalar_prefetch=0,
            grid=(steps,),
            in_specs=[
                pl.BlockSpec((TM, K), lambda i: (i, 0)),
                pl.BlockSpec((K, E), lambda i: (0, 0)),
                pl.BlockSpec((TM, E), lambda i: (0, 0)),
            ],
            out_specs=pl.BlockSpec((TM, E), lambda i: (i, 0)),
        ),
        compiler_params=pltpu.CompilerParams(
            dimension_semantics=("parallel",),
            vmem_limit_bytes=vmem_limit),
        cost_estimate=cost,
    )(x_flat, w_aug, pos_tile)

    return out_flat.reshape(Np, T, E)[:N]


def _reference(x_nchw, w, b, cls_token, pos_embed):
    N, C, H, W = x_nchw.shape
    E = w.shape[1]
    P = H * W
    x_npc = jnp.transpose(x_nchw, (0, 2, 3, 1)).reshape(N, P, C)
    proj = x_npc @ w + b.reshape(1, 1, E)
    cls = jnp.broadcast_to(cls_token.reshape(1, 1, E), (N, 1, E))
    out = jnp.concatenate([cls, proj], axis=1) * math.sqrt(E)
    return out + pos_embed.reshape(1, P + 1, E)


if __name__ == "__main__":
    # Shapes implied by the module: Connect4 board 6x7, 3 input channels,
    # embed_dim=128.
    C, H, W, E = 3, 6, 7, 128
    P = H * W

    key = jax.random.PRNGKey(0)
    k_x, k_w, k_b, k_cls, k_pos, k_x2, k_x3 = jax.random.split(key, 7)

    # Conv2d(C, E, 1x1) weight is (E, C, 1, 1) in torch; stored here as (C, E).
    w = jax.random.normal(k_w, (C, E), dtype=jnp.float32) * 0.1
    b = jax.random.normal(k_b, (E,), dtype=jnp.float32) * 0.1
    cls_token = jax.random.normal(k_cls, (1, 1, E), dtype=jnp.float32)
    pos_embed = jax.random.normal(k_pos, (1, P + 1, E), dtype=jnp.float32)

    # Case 1: tiny batch -> single grid step (block == full array), f32 out.
    N1 = 2
    x1 = jax.random.normal(k_x, (N1, C, H, W), dtype=jnp.float32)
    out1 = jax.block_until_ready(patch_embedding(x1, w, b, cls_token, pos_embed))
    ref1 = _reference(x1, w, b, cls_token, pos_embed)
    assert out1.shape == (N1, P + 1, E), out1.shape
    assert jnp.allclose(out1, ref1, atol=1e-4, rtol=1e-4), "mismatch (N=2)"

    # Case 2: multi-step, adaptive-tile path with a padded tail, f32 out.
    N2 = 20
    x2 = jax.random.normal(k_x2, (N2, C, H, W), dtype=jnp.float32)
    out2 = jax.block_until_ready(
        patch_embedding(x2, w, b, cls_token, pos_embed, batch_tile=8))
    ref2 = _reference(x2, w, b, cls_token, pos_embed)
    assert out2.shape == (N2, P + 1, E), out2.shape
    assert jnp.allclose(out2, ref2, atol=1e-4, rtol=1e-4), "mismatch (N=20)"

    # Case 3: default tile but forced >= 2 steps (v7x megacore path), bf16 out
    # (halves the dominant HBM write traffic).
    N3 = 32
    x3 = jax.random.normal(k_x3, (N3, C, H, W), dtype=jnp.float32)
    out3 = jax.block_until_ready(
        patch_embedding(x3, w, b, cls_token, pos_embed,
                        out_dtype=jnp.bfloat16))
    ref3 = _reference(x3, w, b, cls_token, pos_embed)
    assert out3.shape == (N3, P + 1, E), out3.shape
    assert out3.dtype == jnp.bfloat16, out3.dtype
    assert jnp.allclose(out3.astype(jnp.float32), ref3, atol=0.15, rtol=2e-2), \
        "mismatch (N=32, bf16)"

    print("KERNEL_OK")
</pallas_src>

<mosaic_0001>
module attributes {stable_mosaic.version = 11 : i64} {
  func.func @_patch_embed_kernel(%arg0: i32, %arg1: memref<86x3xf32, #tpu.memory_space<vmem>>, %arg2: memref<3x128xf32, #tpu.memory_space<vmem>>, %arg3: memref<86x128xf32, #tpu.memory_space<vmem>>, %arg4: memref<86x128xf32, #tpu.memory_space<vmem>>) attributes {dimension_semantics = [#tpu.dimension_semantics<parallel>], iteration_bounds = array<i64: 1>, scalar_prefetch = 0 : i64, scratch_operands = 0 : i64, tpu.core_type = #tpu.core_type<tc>, window_params = [{transform_indices = @transform_0, window_bounds = array<i64: 86, 3>}, {pipeline_mode = #tpu.pipeline_mode<synchronous>, transform_indices = @transform_1, window_bounds = array<i64: 3, 128>}, {pipeline_mode = #tpu.pipeline_mode<synchronous>, transform_indices = @transform_2, window_bounds = array<i64: 86, 128>}, {transform_indices = @transform_3, window_bounds = array<i64: 86, 128>}]} {
    %c0 = arith.constant 0 : index
    %c0_0 = arith.constant 0 : index
    %0 = vector.load %arg1[%c0, %c0_0] : memref<86x3xf32, #tpu.memory_space<vmem>>, vector<86x3xf32>
    %c0_1 = arith.constant 0 : index
    %c0_2 = arith.constant 0 : index
    %1 = vector.load %arg2[%c0_1, %c0_2] : memref<3x128xf32, #tpu.memory_space<vmem>>, vector<3x128xf32>
    %cst = arith.constant dense<0.000000e+00> : vector<86x128xf32>
    %2 = tpu.matmul %0, %1, %cst {dimension_numbers = #tpu.dot_dimension_numbers<[1], [0], [0], [1], [0, 0, 1, 1], [], []>} : vector<86x3xf32>, vector<3x128xf32>, vector<86x128xf32> -> vector<86x128xf32>
    %c0_3 = arith.constant 0 : index
    %c0_4 = arith.constant 0 : index
    %3 = vector.load %arg3[%c0_3, %c0_4] : memref<86x128xf32, #tpu.memory_space<vmem>>, vector<86x128xf32>
    %4 = arith.addf %2, %3 : vector<86x128xf32>
    %c0_5 = arith.constant 0 : index
    %c0_6 = arith.constant 0 : index
    %5 = vector.load %arg4[%c0_5, %c0_6] : memref<86x128xf32, #tpu.memory_space<vmem>>, vector<86x128xf32>
    tpu.vector_store %arg4[%c0_5, %c0_6], %4 {strides = array<i32>} : memref<86x128xf32, #tpu.memory_space<vmem>>, vector<86x128xf32>,
    return
  }
  func.func @transform_0(%arg0: i32) -> (i32, i32) {
    %c0_i32 = arith.constant 0 : i32
    %c0_i32_0 = arith.constant 0 : i32
    return %arg0, %c0_i32 : i32, i32
  }
  func.func @transform_1(%arg0: i32) -> (i32, i32) {
    %c0_i32 = arith.constant 0 : i32
    %c0_i32_0 = arith.constant 0 : i32
    %c0_i32_1 = arith.constant 0 : i32
    return %c0_i32, %c0_i32_0 : i32, i32
  }
  func.func @transform_2(%arg0: i32) -> (i32, i32) {
    %c0_i32 = arith.constant 0 : i32
    %c0_i32_0 = arith.constant 0 : i32
    %c0_i32_1 = arith.constant 0 : i32
    return %c0_i32, %c0_i32_0 : i32, i32
  }
  func.func @transform_3(%arg0: i32) -> (i32, i32) {
    %c0_i32 = arith.constant 0 : i32
    %c0_i32_0 = arith.constant 0 : i32
    return %arg0, %c0_i32 : i32, i32
  }
}

</mosaic_0001>

<bundles_post_ra>
// kernel: tpu_custom_call.1
= control target key start
LH: loop header
LB: loop body
LE: loop exit
PB: predicated region body
PF: predicated region fallthrough
CT: control target
= control target key end

     0   :  { %vm72_vm0 = vcmask 1042432   ;;  %v313_v2 = vmov 0.0   ;;  %vm314_vm1 = vmmov 0   ;;  %vm38_vm2 = vcmask 23552   ;;  %s441_s0 = inlined_call_operand.vmem [shape: f32[86,3], index: 0, kind: input, shape index: {}]   ;;  %s442_s1 = inlined_call_operand.vmem [shape: f32[3,128], index: 1, kind: input, shape index: {}]   ;;  %s443_s2 = inlined_call_operand.vmem [shape: f32[86,128], index: 2, kind: input, shape index: {}]   ;;  %s444_s3 = inlined_call_operand.hbm [shape: f32[86,128], index: 3, kind: output, shape index: {}]  }
   0x1   :  { %v26_v0 = vld [vmem:[%s442_s1] sm:$0x7]  ;;  %247 = vmatprep.subr.mxu0 %v313_v2  ;;  %249 = vmatprep.mubr.msk.f32.mxu0 %vm314_vm1, %v313_v2  ;;  %v21_v3 = vld [vmem:[%s441_s0 + $0x30] sm:$0xff]  ;;  %v16_v4 = vld [vmem:[%s441_s0 + $0x8] sm:$0xff] }
   0x2   :  { %v15_v1 = vld [vmem:[%s441_s0] sm:$0xff]  ;;  %248 = vmatpush3.msk.msra.mxu0 %vm72_vm0, %v26_v0  ;;  %282 = vmatprep.subr.mxu1 %v313_v2 }
   0x3   :  { %250 = vmatmul.mubr.msk.f32.vlgmr.msra.gmra.mrb[0].mxu0 %vm38_vm2, %v15_v1  ;;  %283 = vmatpush3.msk.msra.mxu1 %vm72_vm0, %v26_v0 }
   0x4   :  { %267 = vmatprep.mubr.msk.f32.mxu1 %vm314_vm1, %v313_v2  ;;  %252 = vmatprep.mubr.msk.f32.mxu0 %vm314_vm1, %v313_v2 }
   0x5   :  { %8 = vsyncpa [#allocation3], 0  ;;  %268 = vmatmul.mubr.msk.f32.vlgmr.msra.gmra.mrb[0].mxu1 %vm38_vm2, %v21_v3  ;;  %v22_v5 = vld [vmem:[%s441_s0 + $0x38] sm:$0xff]  ;;  %v17_v6 = vld [vmem:[%s441_s0 + $0x10] sm:$0xff]  ;;  %s315_s26 = smov [#allocation2]  }
   0x6   :  { %270 = vmatprep.mubr.msk.f32.mxu1 %vm314_vm1, %v313_v2  ;;  %v23_v7 = vld [vmem:[%s441_s0 + $0x40] sm:$0xff]  ;;  %v18_v8 = vld [vmem:[%s441_s0 + $0x18] sm:$0xff]  ;;  %v24_v9 = vld [vmem:[%s441_s0 + $0x48] sm:$0xff]  ;;  %s212_s27 = sshll.u32 %s315_s26, 4  ;;  %s213_s27 = int_to_ptr.vmem [resolvable:$true] %s212_s27 }
   0x7   :  { %253 = vmatmul.mubr.msk.f32.gmra.mrb[2].mxu0 %vm38_vm2, %v16_v4  ;;  %v19_v10 = vld [vmem:[%s441_s0 + $0x20] sm:$0xff]  ;;  %v25_v11 = vld [vmem:[%s441_s0 + $0x50] sm:$0x3f]  ;;  %v20_v12 = vld [vmem:[%s441_s0 + $0x28] sm:$0xff]  ;;  %s289_s30 = scalar_lea.vmem %s213_s27, 1408  ;;  %p294_p1 = scmp.lt.s32.totalorder %s213_s27, %s213_s27 }
   0x8   :  { %255 = vmatprep.mubr.msk.f32.mxu0 %vm314_vm1, %v313_v2  ;;  %v27_v13 = vld [vmem:[%s443_s2] sm:$0xff]  ;;  %v33_v15 = vld [vmem:[%s443_s2 + $0x30] sm:$0xff]  ;;  %v28_v19 = vld [vmem:[%s443_s2 + $0x8] sm:$0xff]  ;;  %p290_p0 = scmp.ne.s32.totalorder %s213_s27, %s289_s30  ;;  %p295_p2 = scmp.lt.s32.totalorder %s289_s30, %s289_s30 }
   0x9   :  { %271 = vmatmul.mubr.msk.f32.gmra.mrb[2].mxu1 %vm38_vm2, %v22_v5  ;;  %v34_v23 = vld [vmem:[%s443_s2 + $0x38] sm:$0xff]  ;;  %v29_v27 = vld [vmem:[%s443_s2 + $0x10] sm:$0xff]  ;;  %v35_v31 = vld [vmem:[%s443_s2 + $0x40] sm:$0xff] }
   0xa   :  { %273 = vmatprep.mubr.msk.f32.mxu1 %vm314_vm1, %v313_v2  ;;  %v30_v35 = vld [vmem:[%s443_s2 + $0x18] sm:$0xff]  ;;  %v36_v39 = vld [vmem:[%s443_s2 + $0x48] sm:$0xff]  ;;  %v31_v43 = vld [vmem:[%s443_s2 + $0x20] sm:$0xff]  ;;  %p296_p3 = por %p295_p2, %p294_p1 }
   0xb   :  { %256 = vmatmul.mubr.msk.f32.gmra.mrb[4].mxu0 %vm38_vm2, %v17_v6  ;;  %v37_v47 = vld [vmem:[%s443_s2 + $0x50] sm:$0x3f]  ;;  %v32_v51 = vld [vmem:[%s443_s2 + $0x28] sm:$0xff] }
   0xc   :  { %258 = vmatprep.mubr.msk.f32.mxu0 %vm314_vm1, %v313_v2  ;;  %p297_p4 = pnand %p296_p3, %p290_p0 }
   0xd   :  { %274 = vmatmul.mubr.msk.f32.gmra.mrb[4].mxu1 %vm38_vm2, %v23_v7 }
   0xe   :  { %276 = vmatprep.mubr.msk.f32.mxu1 %vm314_vm1, %v313_v2 }
   0xf   :  { %259 = vmatmul.mubr.msk.f32.gmra.mrb[6].mxu0 %vm38_vm2, %v18_v8 }
  0x10   :  { %261 = vmatprep.mubr.msk.f32.mxu0 %vm314_vm1, %v313_v2 }
  0x11   :  { %277 = vmatmul.mubr.msk.f32.gmra.mrb[6].mxu1 %vm38_vm2, %v24_v9 }
  0x12   :  { %279 = vmatprep.mubr.msk.f32.mxu1 %vm314_vm1, %v313_v2 }
  0x13   :  { %262 = vmatmul.mubr.msk.f32.gmra.mrb[8].mxu0 %vm38_vm2, %v19_v10 }
  0x14   :  { %264 = vmatprep.mubr.msk.f32.mxu0 %vm314_vm1, %v313_v2 }
  0x15   :  { %280 = vmatmul.mubr.msk.f32.gmra.mrb[8].mxu1 %vm38_vm2, %v25_v11 }
  0x17   :  { %265 = vmatmul.mubr.msk.f32.gmra.mrb[10].mxu0 %vm38_vm2, %v20_v12 }
  0xd6   :  { %v142_v14 = vpop.f32.mrb[0].mxu0 }
  0xd7   :  { %v143_v16 = vadd.f32 %v142_v14, %v27_v13  ;;  %v251_v17 = vpop.f32.mrb[1].mxu0 }
  0xd8   :  { %v172_v18 = vpop.f32.mrb[0].mxu1 }
  0xd9   :  { %196 = vst [vmem:[#allocation2] sm:$0xff] %v143_v16  ;;  %v173_v20 = vadd.f32 %v172_v18, %v33_v15  ;;  %v269_v21 = vpop.f32.mrb[1].mxu1 }
  0xda   :  { %v147_v22 = vpop.f32.mrb[2].mxu0 }
  0xdb   :  { %202 = vst [vmem:[#allocation2 + $0x30] sm:$0xff] %v173_v20  ;;  %v148_v24 = vadd.f32 %v147_v22, %v28_v19  ;;  %v254_v25 = vpop.f32.mrb[3].mxu0 }
  0xdc   :  { %v177_v26 = vpop.f32.mrb[2].mxu1 }
  0xdd   :  { %197 = vst [vmem:[#allocation2 + $0x8] sm:$0xff] %v148_v24  ;;  %v178_v28 = vadd.f32 %v177_v26, %v34_v23  ;;  %v272_v29 = vpop.f32.mrb[3].mxu1 }
  0xde   :  { %v152_v30 = vpop.f32.mrb[4].mxu0 }
  0xdf   :  { %203 = vst [vmem:[#allocation2 + $0x38] sm:$0xff] %v178_v28  ;;  %v153_v32 = vadd.f32 %v152_v30, %v29_v27  ;;  %v257_v33 = vpop.f32.mrb[5].mxu0 }
  0xe0   :  { %v182_v34 = vpop.f32.mrb[4].mxu1 }
  0xe1   :  { %198 = vst [vmem:[#allocation2 + $0x10] sm:$0xff] %v153_v32  ;;  %v183_v36 = vadd.f32 %v182_v34, %v35_v31  ;;  %v275_v37 = vpop.f32.mrb[5].mxu1 }
  0xe2   :  { %v157_v38 = vpop.f32.mrb[6].mxu0 }
  0xe3   :  { %204 = vst [vmem:[#allocation2 + $0x40] sm:$0xff] %v183_v36  ;;  %v158_v40 = vadd.f32 %v157_v38, %v30_v35  ;;  %v260_v41 = vpop.f32.mrb[7].mxu0 }
  0xe4   :  { %v187_v42 = vpop.f32.mrb[6].mxu1 }
  0xe5   :  { %199 = vst [vmem:[#allocation2 + $0x18] sm:$0xff] %v158_v40  ;;  %v188_v44 = vadd.f32 %v187_v42, %v36_v39  ;;  %v278_v45 = vpop.f32.mrb[7].mxu1 }
  0xe6   :  { %v162_v46 = vpop.f32.mrb[8].mxu0 }
  0xe7   :  { %205 = vst [vmem:[#allocation2 + $0x48] sm:$0xff] %v188_v44  ;;  %v163_v48 = vadd.f32 %v162_v46, %v31_v43  ;;  %v263_v49 = vpop.f32.mrb[9].mxu0 }
  0xe8   :  { %v192_v50 = vpop.f32.mrb[8].mxu1 }
  0xe9   :  { %200 = vst [vmem:[#allocation2 + $0x20] sm:$0xff] %v163_v48  ;;  %v193_v52 = vadd.f32 %v192_v50, %v37_v47  ;;  %v281_v53 = vpop.f32.mrb[9].mxu1 }
  0xea   :  { %v167_v54 = vpop.f32.mrb[10].mxu0 }
  0xeb   :  { %206 = vst [vmem:[#allocation2 + $0x50] sm:$0x3f] %v193_v52  ;;  %v168_v55 = vadd.f32 %v167_v54, %v32_v51  ;;  %v266_v56 = vpop.f32.mrb[11].mxu0 }
  0xed   :  { %201 = vst [vmem:[#allocation2 + $0x28] sm:$0xff] %v168_v55 }
  0xee   :  { %300 = shalt.err (!%p297_p4)
}
  0xef   :  { %s301_s2 = scalar_lea.hbm %s444_s3, 1408 }
  0xf0   :  { %p302_p5 = scmp.ne.s32.totalorder %s444_s3, %s301_s2  ;;  %p305_p6 = scmp.lt.u32.totalorder %s301_s2, %s444_s3 }
  0xf2   :  { %p307_p7 = pnand %p305_p6, %p302_p5 }
  0xf4   :  { %310 = shalt.err (!%p307_p7)
}
  0xf5   :  { %s316_s10 = smov 128   ;;  %s317_s11 = smov 8  }
  0xf6   :  { %218 = dma.vmem_to_hbm [thread:$0]  %s213_s27, 1408, %s444_s3, [#allocation3], %s316_s10, %s316_s10, %s317_s11  }
  0xf7   :  { %311 = dma.done.wait [#allocation3], 1408  }
  0xf8   :  { %312 = vsyncadd [#allocation3], 4294965888 }
  0xf9   :  { %222 = vsyncpa [#allocation3], 1 }

</bundles_post_ra>
